<compile_context>
chip_gen: v7x
topology: tpu7x:2x2x1
jax: 0.10.0
libtpu: 0.0.40
codegen_flags: <defaults>
</compile_context>

<pallas_src>
import jax
import jax.numpy as jnp
from jax import lax
from jax.experimental import pallas as pl
from jax.experimental.pallas import tpu as pltpu

# ----- model hyper-parameters (small, consistent with the module) -----
FIELD_DIMS = (10, 20, 30, 40)       # 4 fields
EMBED_DIM = 8
NUM_CROSS_LAYERS = 3
MLP_DIMS = (32, 16)
DROPOUT = 0.2                       # inference -> identity
BN_EPS = 1e-5
BATCH = 8

F = len(FIELD_DIMS)
D0 = F * EMBED_DIM                  # embed_output_dim = 32
H1, H2 = MLP_DIMS                   # 32, 16
VOCAB = sum(FIELD_DIMS)             # 100
L = NUM_CROSS_LAYERS

TB = 128                            # batch tile (lane axis); multiple of 128

# packing requires the MLP first width to match the embed width (true here: 32 == 32)
assert H1 == D0, "param packing assumes MLP_DIMS[0] == len(field_dims)*embed_dim"
assert D0 >= H2

_off = [0]
for d in FIELD_DIMS[:-1]:
    _off.append(_off[-1] + d)
OFFSETS = tuple(_off)               # (0, 10, 30, 60)

# ----- packed-parameter layout -----
# mats: (H1 + H2, D0)   rows [0:H1)        = (W1 * bn_scale1)^T          (H1, D0)
#                       rows [H1:H1+H2)    = (W2 * bn_scale2)^T          (H2, H1)
ROW_W1 = 0
ROW_W2 = H1
MATS_ROWS = H1 + H2
# vecs: (D0, 2L + 5)    cols [0:L)         = cross weights  cw_i          (D0,)
#                       cols [L:2L)        = cross biases   cb_i          (D0,)
#                       col  2L            = folded bias b1'              (H1,)
#                       col  2L+1          = folded bias b2'              (H2,)
#                       col  2L+2          = final weight, cross part     (D0,)
#                       col  2L+3          = final weight, deep part      (H2,)
#                       col  2L+4 (row 0)  = final bias                   scalar
COL_CW = 0
COL_CB = L
COL_B1 = 2 * L
COL_B2 = 2 * L + 1
COL_WFX = 2 * L + 2
COL_WFH = 2 * L + 3
COL_BF = 2 * L + 4
VECS_COLS = 2 * L + 5


def dcn_kernel(idx_ref,    # (F, TB)   int32   flattened (offset) feature ids
               embT_ref,   # (D0, VOCAB) f32   block-diagonal embedding, transposed
               mats_ref,   # (MATS_ROWS, D0) f32
               vecs_ref,   # (D0, VECS_COLS) f32
               o_ref):     # (1, TB)   f32
    ids = idx_ref[...]                                        # (F, TB)
    tb = ids.shape[1]

    # ---- in-kernel embedding gather via one-hot + MXU matmul ----
    iota_v = lax.broadcasted_iota(jnp.int32, (VOCAB, tb), 0)  # (VOCAB, TB)
    onehot = jnp.zeros((VOCAB, tb), jnp.float32)
    for f in range(F):                                        # static tiny loop
        onehot = onehot + (iota_v == ids[f:f + 1, :]).astype(jnp.float32)
    # x0[d, b] = emb[flat_idx[b, field(d)], d % EMBED_DIM]   (batch on lanes)
    x0 = jnp.dot(embT_ref[...], onehot, preferred_element_type=jnp.float32)  # (D0, TB)

    # ---- CrossNetwork: x_{l+1} = x0 * (w_l . x_l) + b_l + x_l ----
    x = x0
    for i in range(L):
        wcol = vecs_ref[:, COL_CW + i:COL_CW + i + 1]          # (D0, 1)
        xw = jnp.sum(x * wcol, axis=0, keepdims=True)          # (1, TB)
        x = x0 * xw + vecs_ref[:, COL_CB + i:COL_CB + i + 1] + x

    # ---- MLP (BatchNorm folded into the linears) + ReLU; dropout = identity ----
    w1t = mats_ref[ROW_W1:ROW_W1 + H1, :]                      # (H1, D0)
    b1 = vecs_ref[0:H1, COL_B1:COL_B1 + 1]                     # (H1, 1)
    h = jnp.maximum(jnp.dot(w1t, x0, preferred_element_type=jnp.float32) + b1, 0.0)

    w2t = mats_ref[ROW_W2:ROW_W2 + H2, :]                      # (H2, H1)
    b2 = vecs_ref[0:H2, COL_B2:COL_B2 + 1]                     # (H2, 1)
    h = jnp.maximum(jnp.dot(w2t, h, preferred_element_type=jnp.float32) + b2, 0.0)

    # ---- final Linear over concat([cross, deep]) as two contractions ----
    wfx = vecs_ref[:, COL_WFX:COL_WFX + 1]                     # (D0, 1)
    wfh = vecs_ref[0:H2, COL_WFH:COL_WFH + 1]                  # (H2, 1)
    bf = vecs_ref[0:1, COL_BF:COL_BF + 1]                      # (1, 1)
    p = (jnp.sum(x * wfx, axis=0, keepdims=True)
         + jnp.sum(h * wfh, axis=0, keepdims=True)
         + bf)                                                 # (1, TB) lane-dense
    o_ref[...] = p


def init_params(key):
    ks = jax.random.split(key, 8)
    params = {
        "emb": jax.random.normal(ks[0], (VOCAB, EMBED_DIM), jnp.float32) * 0.1,
        "cw": jax.random.normal(ks[1], (L, D0), jnp.float32) * 0.1,
        "cb": jax.random.normal(ks[2], (L, D0), jnp.float32) * 0.01,
        "w1": jax.random.normal(ks[3], (D0, H1), jnp.float32) * 0.1,
        "b1": jax.random.normal(ks[4], (1, H1), jnp.float32) * 0.01,
        "g1": jnp.ones((1, H1), jnp.float32),
        "be1": jnp.zeros((1, H1), jnp.float32),
        "m1": jnp.zeros((1, H1), jnp.float32),
        "v1": jnp.ones((1, H1), jnp.float32),
        "w2": jax.random.normal(ks[5], (H1, H2), jnp.float32) * 0.1,
        "b2": jax.random.normal(ks[6], (1, H2), jnp.float32) * 0.01,
        "g2": jnp.ones((1, H2), jnp.float32),
        "be2": jnp.zeros((1, H2), jnp.float32),
        "m2": jnp.zeros((1, H2), jnp.float32),
        "v2": jnp.ones((1, H2), jnp.float32),
        "wf": jax.random.normal(ks[7], (D0 + H2, 1), jnp.float32) * 0.1,
        "bf": jnp.zeros((1, 1), jnp.float32),
        "offsets": jnp.asarray(OFFSETS, jnp.int32),
    }
    return params


def prepare_inference(params):
    """One-time re-pack: BN folding + transposed/packed weight slabs."""
    emb = params["emb"]
    # Block-diagonal embedding, transposed: (D0, VOCAB).
    embT = jnp.zeros((D0, VOCAB), jnp.float32)
    for f in range(F):
        lo = OFFSETS[f]
        hi = lo + FIELD_DIMS[f]
        embT = embT.at[f * EMBED_DIM:(f + 1) * EMBED_DIM, lo:hi].set(emb[lo:hi, :].T)

    # Fold eval-mode BatchNorm into the preceding Linear.
    s1 = params["g1"][0] * lax.rsqrt(params["v1"][0] + BN_EPS)            # (H1,)
    w1p = params["w1"] * s1[None, :]                                      # (D0, H1)
    b1p = (params["b1"][0] - params["m1"][0]) * s1 + params["be1"][0]     # (H1,)
    s2 = params["g2"][0] * lax.rsqrt(params["v2"][0] + BN_EPS)            # (H2,)
    w2p = params["w2"] * s2[None, :]                                      # (H1, H2)
    b2p = (params["b2"][0] - params["m2"][0]) * s2 + params["be2"][0]     # (H2,)

    mats = jnp.concatenate([w1p.T, w2p.T], axis=0).astype(jnp.float32)    # (H1+H2, D0)

    vecs = jnp.zeros((D0, VECS_COLS), jnp.float32)
    vecs = vecs.at[:, COL_CW:COL_CW + L].set(params["cw"].T)
    vecs = vecs.at[:, COL_CB:COL_CB + L].set(params["cb"].T)
    vecs = vecs.at[0:H1, COL_B1].set(b1p)
    vecs = vecs.at[0:H2, COL_B2].set(b2p)
    vecs = vecs.at[:, COL_WFX].set(params["wf"][:D0, 0])
    vecs = vecs.at[0:H2, COL_WFH].set(params["wf"][D0:, 0])
    vecs = vecs.at[0, COL_BF].set(params["bf"][0, 0])

    return {"embT": embT, "mats": mats, "vecs": vecs, "offsets": params["offsets"]}


@jax.jit
def dcn_forward(idx, prepped):
    """idx: int32 (B, F) -> float32 (B,)"""
    B = idx.shape[0]
    flat = (idx.astype(jnp.int32) + prepped["offsets"][None, :]).T        # (F, B)
    Bp = ((B + TB - 1) // TB) * TB
    flat = jnp.pad(flat, ((0, 0), (0, Bp - B)))                           # pad batch -> lane tiles

    out = pl.pallas_call(
        dcn_kernel,
        out_shape=jax.ShapeDtypeStruct((1, Bp), jnp.float32),
        grid=(Bp // TB,),
        in_specs=[
            pl.BlockSpec((F, TB), lambda i: (0, i)),                      # ids per batch tile
            pl.BlockSpec((D0, VOCAB), lambda i: (0, 0)),                  # VMEM-resident table
            pl.BlockSpec((MATS_ROWS, D0), lambda i: (0, 0)),              # packed matmul weights
            pl.BlockSpec((D0, VECS_COLS), lambda i: (0, 0)),              # packed vector params
        ],
        out_specs=pl.BlockSpec((1, TB), lambda i: (0, i)),                # lane-dense output
        compiler_params=pltpu.CompilerParams(dimension_semantics=("parallel",)),
    )(flat, prepped["embT"], prepped["mats"], prepped["vecs"])
    return out[0, :B]                                                     # == p.squeeze(1)


def dcn_reference(idx, params):
    """Pure-JAX reference mirroring the PyTorch forward (eval mode, unfolded BN)."""
    flat_idx = idx + params["offsets"][None, :]
    x0 = jnp.take(params["emb"], flat_idx, axis=0).reshape(idx.shape[0], D0)
    x = x0
    for i in range(L):
        xw = jnp.sum(x * params["cw"][i][None, :], axis=-1, keepdims=True)
        x = x0 * xw + params["cb"][i][None, :] + x
    h = x0 @ params["w1"] + params["b1"]
    h = (h - params["m1"]) / jnp.sqrt(params["v1"] + BN_EPS) * params["g1"] + params["be1"]
    h = jnp.maximum(h, 0.0)
    h = h @ params["w2"] + params["b2"]
    h = (h - params["m2"]) / jnp.sqrt(params["v2"] + BN_EPS) * params["g2"] + params["be2"]
    h = jnp.maximum(h, 0.0)
    stack = jnp.concatenate([x, h], axis=1)
    return (stack @ params["wf"] + params["bf"])[:, 0]


if __name__ == "__main__":
    key = jax.random.PRNGKey(0)
    pkey, xkey = jax.random.split(key)
    params = init_params(pkey)
    prepped = prepare_inference(params)

    # categorical feature ids, one per field, each < field_dims[f]
    maxvals = jnp.asarray(FIELD_DIMS, jnp.int32)[None, :]
    x = (jax.random.randint(xkey, (BATCH, F), 0, 1 << 20) % maxvals).astype(jnp.int32)

    out = jax.block_until_ready(dcn_forward(x, prepped))
    ref = dcn_reference(x, params)

    assert out.shape == (BATCH,)
    assert jnp.allclose(out, ref, atol=1e-3, rtol=1e-3), (out, ref)
    print("KERNEL_OK")
</pallas_src>

<mosaic_0001>
module attributes {stable_mosaic.version = 11 : i64} {
  func.func @dcn_kernel(%arg0: i32, %arg1: memref<4x128xi32, #tpu.memory_space<vmem>>, %arg2: memref<32x100xf32, #tpu.memory_space<vmem>>, %arg3: memref<48x32xf32, #tpu.memory_space<vmem>>, %arg4: memref<32x11xf32, #tpu.memory_space<vmem>>, %arg5: memref<1x128xf32, #tpu.memory_space<vmem>>) attributes {dimension_semantics = [#tpu.dimension_semantics<parallel>], iteration_bounds = array<i64: 1>, scalar_prefetch = 0 : i64, scratch_operands = 0 : i64, tpu.core_type = #tpu.core_type<tc>, window_params = [{transform_indices = @transform_0, window_bounds = array<i64: 4, 128>}, {pipeline_mode = #tpu.pipeline_mode<synchronous>, transform_indices = @transform_1, window_bounds = array<i64: 32, 100>}, {pipeline_mode = #tpu.pipeline_mode<synchronous>, transform_indices = @transform_2, window_bounds = array<i64: 48, 32>}, {pipeline_mode = #tpu.pipeline_mode<synchronous>, transform_indices = @transform_3, window_bounds = array<i64: 32, 11>}, {transform_indices = @transform_4, window_bounds = array<i64: 1, 128>}]} {
    %c0 = arith.constant 0 : index
    %c0_0 = arith.constant 0 : index
    %0 = vector.load %arg1[%c0, %c0_0] : memref<4x128xi32, #tpu.memory_space<vmem>>, vector<4x128xi32>
    %1 = tpu.iota {dimensions = array<i32: 0>} : vector<100x128xi32>
    %cst = arith.constant 0.000000e+00 : f32
    %2 = vector.broadcast %cst : f32 to vector<100x128xf32>
    %3 = vector.extract_strided_slice %0 {offsets = [0, 0], sizes = [1, 128], strides = [1, 1]} : vector<4x128xi32> to vector<1x128xi32>
    %4 = vector.broadcast %3 : vector<1x128xi32> to vector<100x128xi32>
    %5 = arith.cmpi eq, %1, %4 : vector<100x128xi32>
    %6 = arith.extui %5 : vector<100x128xi1> to vector<100x128xi32>
    %7 = arith.sitofp %6 : vector<100x128xi32> to vector<100x128xf32>
    %8 = arith.addf %2, %7 : vector<100x128xf32>
    %9 = vector.extract_strided_slice %0 {offsets = [1, 0], sizes = [1, 128], strides = [1, 1]} : vector<4x128xi32> to vector<1x128xi32>
    %10 = vector.broadcast %9 : vector<1x128xi32> to vector<100x128xi32>
    %11 = arith.cmpi eq, %1, %10 : vector<100x128xi32>
    %12 = arith.extui %11 : vector<100x128xi1> to vector<100x128xi32>
    %13 = arith.sitofp %12 : vector<100x128xi32> to vector<100x128xf32>
    %14 = arith.addf %8, %13 : vector<100x128xf32>
    %15 = vector.extract_strided_slice %0 {offsets = [2, 0], sizes = [1, 128], strides = [1, 1]} : vector<4x128xi32> to vector<1x128xi32>
    %16 = vector.broadcast %15 : vector<1x128xi32> to vector<100x128xi32>
    %17 = arith.cmpi eq, %1, %16 : vector<100x128xi32>
    %18 = arith.extui %17 : vector<100x128xi1> to vector<100x128xi32>
    %19 = arith.sitofp %18 : vector<100x128xi32> to vector<100x128xf32>
    %20 = arith.addf %14, %19 : vector<100x128xf32>
    %21 = vector.extract_strided_slice %0 {offsets = [3, 0], sizes = [1, 128], strides = [1, 1]} : vector<4x128xi32> to vector<1x128xi32>
    %22 = vector.broadcast %21 : vector<1x128xi32> to vector<100x128xi32>
    %23 = arith.cmpi eq, %1, %22 : vector<100x128xi32>
    %24 = arith.extui %23 : vector<100x128xi1> to vector<100x128xi32>
    %25 = arith.sitofp %24 : vector<100x128xi32> to vector<100x128xf32>
    %26 = arith.addf %20, %25 : vector<100x128xf32>
    %c0_1 = arith.constant 0 : index
    %c0_2 = arith.constant 0 : index
    %27 = vector.load %arg2[%c0_1, %c0_2] : memref<32x100xf32, #tpu.memory_space<vmem>>, vector<32x100xf32>
    %cst_3 = arith.constant dense<0.000000e+00> : vector<32x128xf32>
    %28 = tpu.matmul %27, %26, %cst_3 {dimension_numbers = #tpu.dot_dimension_numbers<[1], [0], [0], [1], [0, 0, 1, 1], [], []>} : vector<32x100xf32>, vector<100x128xf32>, vector<32x128xf32> -> vector<32x128xf32>
    %c0_4 = arith.constant 0 : index
    %c0_5 = arith.constant 0 : index
    %29 = vector.load %arg4[%c0_4, %c0_5] : memref<32x11xf32, #tpu.memory_space<vmem>>, vector<32x1xf32>
    %30 = vector.broadcast %29 : vector<32x1xf32> to vector<32x128xf32>
    %31 = arith.mulf %28, %30 : vector<32x128xf32>
    %cst_6 = arith.constant dense<0.000000e+00> : vector<128xf32>
    %32 = vector.multi_reduction <add>, %31, %cst_6 [0] : vector<32x128xf32> to vector<128xf32>
    %33 = vector.shape_cast %32 : vector<128xf32> to vector<1x128xf32>
    %34 = vector.broadcast %33 : vector<1x128xf32> to vector<32x128xf32>
    %35 = arith.mulf %28, %34 : vector<32x128xf32>
    %c0_7 = arith.constant 0 : index
    %c3 = arith.constant 3 : index
    %36 = vector.load %arg4[%c0_7, %c3] : memref<32x11xf32, #tpu.memory_space<vmem>>, vector<32x1xf32>
    %37 = vector.broadcast %36 : vector<32x1xf32> to vector<32x128xf32>
    %38 = arith.addf %35, %37 : vector<32x128xf32>
    %39 = arith.addf %38, %28 : vector<32x128xf32>
    %c0_8 = arith.constant 0 : index
    %c1 = arith.constant 1 : index
    %40 = vector.load %arg4[%c0_8, %c1] : memref<32x11xf32, #tpu.memory_space<vmem>>, vector<32x1xf32>
    %41 = vector.broadcast %40 : vector<32x1xf32> to vector<32x128xf32>
    %42 = arith.mulf %39, %41 : vector<32x128xf32>
    %cst_9 = arith.constant dense<0.000000e+00> : vector<128xf32>
    %43 = vector.multi_reduction <add>, %42, %cst_9 [0] : vector<32x128xf32> to vector<128xf32>
    %44 = vector.shape_cast %43 : vector<128xf32> to vector<1x128xf32>
    %45 = vector.broadcast %44 : vector<1x128xf32> to vector<32x128xf32>
    %46 = arith.mulf %28, %45 : vector<32x128xf32>
    %c0_10 = arith.constant 0 : index
    %c4 = arith.constant 4 : index
    %47 = vector.load %arg4[%c0_10, %c4] : memref<32x11xf32, #tpu.memory_space<vmem>>, vector<32x1xf32>
    %48 = vector.broadcast %47 : vector<32x1xf32> to vector<32x128xf32>
    %49 = arith.addf %46, %48 : vector<32x128xf32>
    %50 = arith.addf %49, %39 : vector<32x128xf32>
    %c0_11 = arith.constant 0 : index
    %c2 = arith.constant 2 : index
    %51 = vector.load %arg4[%c0_11, %c2] : memref<32x11xf32, #tpu.memory_space<vmem>>, vector<32x1xf32>
    %52 = vector.broadcast %51 : vector<32x1xf32> to vector<32x128xf32>
    %53 = arith.mulf %50, %52 : vector<32x128xf32>
    %cst_12 = arith.constant dense<0.000000e+00> : vector<128xf32>
    %54 = vector.multi_reduction <add>, %53, %cst_12 [0] : vector<32x128xf32> to vector<128xf32>
    %55 = vector.shape_cast %54 : vector<128xf32> to vector<1x128xf32>
    %56 = vector.broadcast %55 : vector<1x128xf32> to vector<32x128xf32>
    %57 = arith.mulf %28, %56 : vector<32x128xf32>
    %c0_13 = arith.constant 0 : index
    %c5 = arith.constant 5 : index
    %58 = vector.load %arg4[%c0_13, %c5] : memref<32x11xf32, #tpu.memory_space<vmem>>, vector<32x1xf32>
    %59 = vector.broadcast %58 : vector<32x1xf32> to vector<32x128xf32>
    %60 = arith.addf %57, %59 : vector<32x128xf32>
    %61 = arith.addf %60, %50 : vector<32x128xf32>
    %c0_14 = arith.constant 0 : index
    %c0_15 = arith.constant 0 : index
    %62 = vector.load %arg3[%c0_14, %c0_15] : memref<48x32xf32, #tpu.memory_space<vmem>>, vector<32x32xf32>
    %c0_16 = arith.constant 0 : index
    %c6 = arith.constant 6 : index
    %63 = vector.load %arg4[%c0_16, %c6] : memref<32x11xf32, #tpu.memory_space<vmem>>, vector<32x1xf32>
    %cst_17 = arith.constant dense<0.000000e+00> : vector<32x128xf32>
    %64 = tpu.matmul %62, %28, %cst_17 {dimension_numbers = #tpu.dot_dimension_numbers<[1], [0], [0], [1], [0, 0, 1, 1], [], []>} : vector<32x32xf32>, vector<32x128xf32>, vector<32x128xf32> -> vector<32x128xf32>
    %65 = vector.broadcast %63 : vector<32x1xf32> to vector<32x128xf32>
    %66 = arith.addf %64, %65 : vector<32x128xf32>
    %cst_18 = arith.constant 0.000000e+00 : f32
    %67 = vector.broadcast %cst_18 : f32 to vector<32x128xf32>
    %68 = arith.maximumf %66, %67 : vector<32x128xf32>
    %c32 = arith.constant 32 : index
    %c0_19 = arith.constant 0 : index
    %69 = vector.load %arg3[%c32, %c0_19] : memref<48x32xf32, #tpu.memory_space<vmem>>, vector<16x32xf32>
    %c0_20 = arith.constant 0 : index
    %c7 = arith.constant 7 : index
    %70 = vector.load %arg4[%c0_20, %c7] : memref<32x11xf32, #tpu.memory_space<vmem>>, vector<16x1xf32>
    %cst_21 = arith.constant dense<0.000000e+00> : vector<16x128xf32>
    %71 = tpu.matmul %69, %68, %cst_21 {dimension_numbers = #tpu.dot_dimension_numbers<[1], [0], [0], [1], [0, 0, 1, 1], [], []>} : vector<16x32xf32>, vector<32x128xf32>, vector<16x128xf32> -> vector<16x128xf32>
    %72 = vector.broadcast %70 : vector<16x1xf32> to vector<16x128xf32>
    %73 = arith.addf %71, %72 : vector<16x128xf32>
    %cst_22 = arith.constant 0.000000e+00 : f32
    %74 = vector.broadcast %cst_22 : f32 to vector<16x128xf32>
    %75 = arith.maximumf %73, %74 : vector<16x128xf32>
    %c0_23 = arith.constant 0 : index
    %c8 = arith.constant 8 : index
    %76 = vector.load %arg4[%c0_23, %c8] : memref<32x11xf32, #tpu.memory_space<vmem>>, vector<32x1xf32>
    %c0_24 = arith.constant 0 : index
    %c9 = arith.constant 9 : index
    %77 = vector.load %arg4[%c0_24, %c9] : memref<32x11xf32, #tpu.memory_space<vmem>>, vector<16x1xf32>
    %c0_25 = arith.constant 0 : index
    %c10 = arith.constant 10 : index
    %78 = vector.load %arg4[%c0_25, %c10] : memref<32x11xf32, #tpu.memory_space<vmem>>, vector<1x1xf32>
    %79 = vector.broadcast %76 : vector<32x1xf32> to vector<32x128xf32>
    %80 = arith.mulf %61, %79 : vector<32x128xf32>
    %cst_26 = arith.constant dense<0.000000e+00> : vector<128xf32>
    %81 = vector.multi_reduction <add>, %80, %cst_26 [0] : vector<32x128xf32> to vector<128xf32>
    %82 = vector.shape_cast %81 : vector<128xf32> to vector<1x128xf32>
    %83 = vector.broadcast %77 : vector<16x1xf32> to vector<16x128xf32>
    %84 = arith.mulf %75, %83 : vector<16x128xf32>
    %cst_27 = arith.constant dense<0.000000e+00> : vector<128xf32>
    %85 = vector.multi_reduction <add>, %84, %cst_27 [0] : vector<16x128xf32> to vector<128xf32>
    %86 = vector.shape_cast %85 : vector<128xf32> to vector<1x128xf32>
    %87 = arith.addf %82, %86 : vector<1x128xf32>
    %88 = vector.broadcast %78 : vector<1x1xf32> to vector<1x128xf32>
    %89 = arith.addf %87, %88 : vector<1x128xf32>
    %c0_28 = arith.constant 0 : index
    %c0_29 = arith.constant 0 : index
    %90 = vector.load %arg5[%c0_28, %c0_29] : memref<1x128xf32, #tpu.memory_space<vmem>>, vector<1x128xf32>
    tpu.vector_store %arg5[%c0_28, %c0_29], %89 {strides = array<i32>} : memref<1x128xf32, #tpu.memory_space<vmem>>, vector<1x128xf32>,
    return
  }
  func.func @transform_0(%arg0: i32) -> (i32, i32) {
    %c0_i32 = arith.constant 0 : i32
    %c0_i32_0 = arith.constant 0 : i32
    return %c0_i32, %arg0 : i32, i32
  }
  func.func @transform_1(%arg0: i32) -> (i32, i32) {
    %c0_i32 = arith.constant 0 : i32
    %c0_i32_0 = arith.constant 0 : i32
    %c0_i32_1 = arith.constant 0 : i32
    return %c0_i32, %c0_i32_0 : i32, i32
  }
  func.func @transform_2(%arg0: i32) -> (i32, i32) {
    %c0_i32 = arith.constant 0 : i32
    %c0_i32_0 = arith.constant 0 : i32
    %c0_i32_1 = arith.constant 0 : i32
    return %c0_i32, %c0_i32_0 : i32, i32
  }
  func.func @transform_3(%arg0: i32) -> (i32, i32) {
    %c0_i32 = arith.constant 0 : i32
    %c0_i32_0 = arith.constant 0 : i32
    %c0_i32_1 = arith.constant 0 : i32
    return %c0_i32, %c0_i32_0 : i32, i32
  }
  func.func @transform_4(%arg0: i32) -> (i32, i32) {
    %c0_i32 = arith.constant 0 : i32
    %c0_i32_0 = arith.constant 0 : i32
    return %c0_i32, %arg0 : i32, i32
  }
}

</mosaic_0001>

<bundles_post_ra>
// kernel: dcn_forward.1
= control target key start
LH: loop header
LB: loop body
LE: loop exit
PB: predicated region body
PF: predicated region fallthrough
CT: control target
= control target key end

     0   :  { %v18_v0 = vlaneseq  ;;  %vm260_vm0 = vcmask 818176   ;;  %v1044_v4 = vmov 6   ;;  %v1045_v25 = vmov 0.0   ;;  %s1409_s0 = inlined_call_operand.vmem [shape: s32[4,128], index: 0, kind: input, shape index: {}]   ;;  %s1410_s1 = inlined_call_operand.vmem [shape: f32[32,100], index: 1, kind: input, shape index: {}]   ;;  %s1411_s3 = inlined_call_operand.vmem [shape: f32[32,11], index: 3, kind: input, shape index: {}]   ;;  %s1412_s2 = inlined_call_operand.vmem [shape: f32[48,32], index: 2, kind: input, shape index: {}]   ;;  %s1413_s4 = inlined_call_operand.vmem [shape: f32[1,128], index: 4, kind: output, shape index: {}]  }
   0x1   :  { %v256_v1 = vld [vmem:[%s1410_s1] sm:$0xff]  ;;  %1023 = vset.pattern.permute.xlu1 %v1044_v4  ;;  %v1093_v5 = vld [vmem:[%s1411_s3 + $0x10] sm:$0xff]  ;;  %1022 = vset.pattern.permute.xlu0 %v1044_v4  ;;  %v1109_v11 = vld [vmem:[%s1411_s3 + $0x18] sm:$0xff]  ;;  %v1046_v34 = vmov 0   ;;  %v1047_v59 = vmov 3  }
   0x2   :  { %v17_v2 = vld [vmem:[%s1409_s0] sm:$0xf]  ;;  %v1087_v3 = vshrl.u32 %v18_v0, 7  ;;  %939 = vmatprep.mubr.msk.f32.mxu0 %vm260_vm0, %v256_v1  ;;  %554 = vperm.xlu1 %1023, %v1093_v5   ;;  %v1124_v16 = vld [vmem:[%s1411_s3 + $0x8] sm:$0xff] }
   0x3   :  { %v1099_v6 = vld [vmem:[%s1411_s3] sm:$0xff] }
   0x4   :  { %v20_v7 = vadd.s32 8, %v1087_v3  ;;  %v34_v8 = vsub.s32 0, %v1087_v3  ;;  %v90_v9 = vsub.s32 1, %v1087_v3  ;;  %v146_v10 = vsub.s32 2, %v1087_v3  ;;  %546 = vperm.xlu0 %1022, %v1099_v6  }
   0x5   :  { %v202_v12 = vsub.s32 3, %v1087_v3  ;;  %v1113_v13 = vadd.s32 16, %v1087_v3  ;;  %v1116_v14 = vadd.s32 24, %v1087_v3  ;;  %v1119_v15 = vadd.s32 32, %v1087_v3 }
   0x6   :  { %v1126_v17 = vrot.slane %v17_v2, %v34_v8  ;;  %v1128_v18 = vrot.slane %v17_v2, %v90_v9  ;;  %v1130_v19 = vrot.slane %v17_v2, %v146_v10  ;;  %v1133_v20 = vadd.s32 40, %v1087_v3  ;;  %558 = vperm.xlu1 %1023, %v1109_v11  }
   0x7   :  { %v1135_v21 = vrot.slane %v17_v2, %v202_v12  ;;  %v1138_v22 = vadd.s32 48, %v1087_v3  ;;  %v1141_v23 = vadd.s32 56, %v1087_v3  ;;  %v1144_v24 = vadd.s32 64, %v1087_v3 }
   0x8   :  { %vm36_vm1 = vcmp.eq.s32.totalorder %v1087_v3, %v1126_v17  ;;  %vm37_vm2 = vcmp.eq.s32.totalorder %v20_v7, %v1126_v17  ;;  %vm92_vm3 = vcmp.eq.s32.totalorder %v1087_v3, %v1128_v18  ;;  %vm93_vm4 = vcmp.eq.s32.totalorder %v20_v7, %v1128_v18  ;;  %550 = vperm.xlu0 %1022, %v1124_v16  }
   0x9   :  { %v819_v26 = vsel %vm36_vm1, 1.0, %v1045_v25  ;;  %v820_v27 = vsel %vm37_vm2, 1.0, %v1045_v25  ;;  %v832_v28 = vsel %vm92_vm3, 1.0, %v1045_v25  ;;  %v833_v29 = vsel %vm93_vm4, 1.0, %v1045_v25 }
   0xa   :  { %v131_v30 = vadd.f32 %v832_v28, %v819_v26  ;;  %v132_v31 = vadd.f32 %v833_v29, %v820_v27  ;;  %vm148_vm5 = vcmp.eq.s32.totalorder %v1087_v3, %v1130_v19  ;;  %vm149_vm6 = vcmp.eq.s32.totalorder %v20_v7, %v1130_v19  ;;  %1025 = vset.pattern.permute.xlu1 %v1046_v34 }
   0xb   :  { %v845_v32 = vsel %vm148_vm5, 1.0, %v1045_v25  ;;  %v846_v33 = vsel %vm149_vm6, 1.0, %v1045_v25  ;;  %vm204_vm7 = vcmp.eq.s32.totalorder %v1087_v3, %v1135_v21  ;;  %vm205_vm8 = vcmp.eq.s32.totalorder %v20_v7, %v1135_v21  ;;  %373 = vperm.xlu1 %1025, %v1124_v16  }
   0xc   :  { %v187_v35 = vadd.f32 %v845_v32, %v131_v30  ;;  %v188_v36 = vadd.f32 %v846_v33, %v132_v31  ;;  %v858_v37 = vsel %vm204_vm7, 1.0, %v1045_v25  ;;  %v859_v38 = vsel %vm205_vm8, 1.0, %v1045_v25  ;;  %1024 = vset.pattern.permute.xlu0 %v1046_v34 }
   0xd   :  { %vm38_vm9 = vcmp.eq.s32.totalorder %v1113_v13, %v1126_v17  ;;  %vm39_vm10 = vcmp.eq.s32.totalorder %v1116_v14, %v1126_v17  ;;  %vm94_vm11 = vcmp.eq.s32.totalorder %v1113_v13, %v1128_v18  ;;  %vm95_vm12 = vcmp.eq.s32.totalorder %v1116_v14, %v1128_v18  ;;  %368 = vperm.xlu0 %1024, %v1099_v6  }
   0xe   :  { %v243_v39 = vadd.f32 %v858_v37, %v187_v35  ;;  %v244_v40 = vadd.f32 %v859_v38, %v188_v36  ;;  %v821_v41 = vsel %vm38_vm9, 1.0, %v1045_v25  ;;  %v822_v42 = vsel %vm39_vm10, 1.0, %v1045_v25 }
   0xf   :  { %v834_v43 = vsel %vm94_vm11, 1.0, %v1045_v25  ;;  %v835_v44 = vsel %vm95_vm12, 1.0, %v1045_v25  ;;  %vm150_vm13 = vcmp.eq.s32.totalorder %v1113_v13, %v1130_v19  ;;  %vm151_vm14 = vcmp.eq.s32.totalorder %v1116_v14, %v1130_v19  ;;  %378 = vperm.xlu1 %1025, %v1093_v5  }
  0x10   :  { %v970_v45 = vpack.c.bf16 %v244_v40, %v243_v39  ;;  %v133_v46 = vadd.f32 %v834_v43, %v821_v41  ;;  %v134_v47 = vadd.f32 %v835_v44, %v822_v42  ;;  %v847_v48 = vsel %vm150_vm13, 1.0, %v1045_v25 }
  0x11   :  { %v848_v49 = vsel %vm151_vm14, 1.0, %v1045_v25  ;;  %vm206_vm15 = vcmp.eq.s32.totalorder %v1113_v13, %v1135_v21  ;;  %vm207_vm1 = vcmp.eq.s32.totalorder %v1116_v14, %v1135_v21  ;;  %vm40_vm2 = vcmp.eq.s32.totalorder %v1119_v15, %v1126_v17  ;;  %383 = vperm.xlu0 %1024, %v1109_v11  }
  0x12   :  { %971 = vmatprep.subr.bf16.mxu0 %v970_v45  ;;  %v189_v50 = vadd.f32 %v847_v48, %v133_v46  ;;  %v190_v51 = vadd.f32 %v848_v49, %v134_v47  ;;  %v860_v52 = vsel %vm206_vm15, 1.0, %v1045_v25  ;;  %v861_v53 = vsel %vm207_vm1, 1.0, %v1045_v25 }
  0x13   :  { %973 = vmatpush3.bf16.msra.mxu0 %v970_v45  ;;  %vm41_vm3 = vcmp.eq.s32.totalorder %v1133_v20, %v1126_v17  ;;  %v823_v54 = vsel %vm40_vm2, 1.0, %v1045_v25  ;;  %vm96_vm4 = vcmp.eq.s32.totalorder %v1119_v15, %v1128_v18  ;;  %vm97_vm5 = vcmp.eq.s32.totalorder %v1133_v20, %v1128_v18  ;;  %1026 = vset.pattern.permute.xlu1 %v1047_v59 }
  0x14   :  { %v245_v55 = vadd.f32 %v860_v52, %v189_v50  ;;  %v246_v56 = vadd.f32 %v861_v53, %v190_v51  ;;  %v824_v57 = vsel %vm41_vm3, 1.0, %v1045_v25  ;;  %v836_v58 = vsel %vm96_vm4, 1.0, %v1045_v25  ;;  %404 = vperm.xlu1 %1026, %v1099_v6  }
  0x15   :  { %v837_v60 = vsel %vm97_vm5, 1.0, %v1045_v25  ;;  %v135_v61 = vadd.f32 %v836_v58, %v823_v54  ;;  %vm152_vm6 = vcmp.eq.s32.totalorder %v1119_v15, %v1130_v19  ;;  %vm153_vm7 = vcmp.eq.s32.totalorder %v1133_v20, %v1130_v19  ;;  %1027 = vset.pattern.permute.xlu0 %v1047_v59 }
  0x16   :  { %v974_v62 = vpack.c.bf16 %v246_v56, %v245_v55  ;;  %v136_v63 = vadd.f32 %v837_v60, %v824_v57  ;;  %v849_v0 = vsel %vm152_vm6, 1.0, %v1045_v25  ;;  %v850_v1 = vsel %vm153_vm7, 1.0, %v1045_v25  ;;  %408 = vperm.xlu0 %1027, %v1124_v16  }
  0x17   :  { %v191_v2 = vadd.f32 %v849_v0, %v135_v61  ;;  %vm208_vm8 = vcmp.eq.s32.totalorder %v1119_v15, %v1135_v21  ;;  %vm209_vm9 = vcmp.eq.s32.totalorder %v1133_v20, %v1135_v21  ;;  %vm42_vm10 = vcmp.eq.s32.totalorder %v1138_v22, %v1126_v17 }
  0x18   :  { %975 = vmatprep.subr.bf16.mxu0 %v974_v62  ;;  %v192_v4 = vadd.f32 %v850_v1, %v136_v63  ;;  %v862_v7 = vsel %vm208_vm8, 1.0, %v1045_v25  ;;  %v863_v8 = vsel %vm209_vm9, 1.0, %v1045_v25  ;;  %vm43_vm11 = vcmp.eq.s32.totalorder %v1141_v23, %v1126_v17  ;;  %412 = vperm.xlu1 %1026, %v1093_v5  }
  0x19   :  { %977 = vmatpush3.bf16.msra.mxu0 %v974_v62  ;;  %v247_v9 = vadd.f32 %v862_v7, %v191_v2  ;;  %v825_v10 = vsel %vm42_vm10, 1.0, %v1045_v25  ;;  %v826_v12 = vsel %vm43_vm11, 1.0, %v1045_v25  ;;  %vm98_vm12 = vcmp.eq.s32.totalorder %v1138_v22, %v1128_v18 }
  0x1a   :  { %v248_v13 = vadd.f32 %v863_v8, %v192_v4  ;;  %vm99_vm13 = vcmp.eq.s32.totalorder %v1141_v23, %v1128_v18  ;;  %v838_v14 = vsel %vm98_vm12, 1.0, %v1045_v25  ;;  %vm154_vm14 = vcmp.eq.s32.totalorder %v1138_v22, %v1130_v19 }
  0x1b   :  { %v1048_v15 = vmov 1   ;;  %v839_v20 = vsel %vm99_vm13, 1.0, %v1045_v25  ;;  %v137_v26 = vadd.f32 %v838_v14, %v825_v10  ;;  %vm155_vm15 = vcmp.eq.s32.totalorder %v1141_v23, %v1130_v19 }
  0x1c   :  { %1028 = vset.pattern.permute.xlu0 %v1048_v15  ;;  %v851_v27 = vsel %vm154_vm14, 1.0, %v1045_v25  ;;  %v978_v28 = vpack.c.bf16 %v248_v13, %v247_v9  ;;  %v138_v29 = vadd.f32 %v839_v20, %v826_v12  ;;  %v852_v30 = vsel %vm155_vm15, 1.0, %v1045_v25  ;;  %416 = vperm.xlu1 %1026, %v1109_v11   ;;  %v259_v20 = vld [vmem:[%s1410_s1 + $0x18] sm:$0xff] }
  0x1d   :  { %428 = vperm.xlu0 %1028, %v1099_v6   ;;  %vm210_vm1 = vcmp.eq.s32.totalorder %v1138_v22, %v1135_v21  ;;  %v193_v31 = vadd.f32 %v851_v27, %v137_v26  ;;  %vm211_vm2 = vcmp.eq.s32.totalorder %v1141_v23, %v1135_v21  ;;  %v28_v33 = vadd.s32 72, %v1087_v3  ;;  %v541_v27 = vld [vmem:[%s1412_s2] sm:$0xff] }
  0x1e   :  { %v864_v32 = vsel %vm210_vm1, 1.0, %v1045_v25  ;;  %979 = vmatprep.subr.bf16.mxu0 %v978_v28  ;;  %v194_v34 = vadd.f32 %v852_v30, %v138_v29  ;;  %v865_v35 = vsel %vm211_vm2, 1.0, %v1045_v25  ;;  %vm44_vm3 = vcmp.eq.s32.totalorder %v1144_v24, %v1126_v17 }
  0x1f   :  { %vm100_vm4 = vcmp.eq.s32.totalorder %v1144_v24, %v1128_v18  ;;  %981 = vmatpush3.bf16.msra.mxu0 %v978_v28  ;;  %v249_v22 = vadd.f32 %v864_v32, %v193_v31  ;;  %vm45_vm5 = vcmp.eq.s32.totalorder %v28_v33, %v1126_v17  ;;  %v827_v23 = vsel %vm44_vm3, 1.0, %v1045_v25 }
  0x20   :  { %vm101_vm6 = vcmp.eq.s32.totalorder %v28_v33, %v1128_v18  ;;  %v250_v36 = vadd.f32 %v865_v35, %v194_v34  ;;  %v828_v37 = vsel %vm45_vm5, 1.0, %v1045_v25  ;;  %v840_v38 = vsel %vm100_vm4, 1.0, %v1045_v25  ;;  %1029 = vset.pattern.permute.xlu1 %v1048_v15 }
  0x21   :  { %440 = vperm.xlu0 %1028, %v1109_v11   ;;  %v841_v39 = vsel %vm101_vm6, 1.0, %v1045_v25  ;;  %v139_v40 = vadd.f32 %v840_v38, %v827_v23  ;;  %vm156_vm7 = vcmp.eq.s32.totalorder %v1144_v24, %v1130_v19  ;;  %vm157_vm8 = vcmp.eq.s32.totalorder %v28_v33, %v1130_v19  ;;  %432 = vperm.xlu1 %1029, %v1124_v16  }
  0x22   :  { %v140_v41 = vadd.f32 %v841_v39, %v828_v37  ;;  %v982_v42 = vpack.c.bf16 %v250_v36, %v249_v22  ;;  %v853_v43 = vsel %vm156_vm7, 1.0, %v1045_v25  ;;  %v854_v44 = vsel %vm157_vm8, 1.0, %v1045_v25 }
  0x23   :  { %vm212_vm9 = vcmp.eq.s32.totalorder %v1144_v24, %v1135_v21  ;;  %v195_v45 = vadd.f32 %v853_v43, %v139_v40  ;;  %vm213_vm10 = vcmp.eq.s32.totalorder %v28_v33, %v1135_v21  ;;  %v1049_v48 = vmov 4  }
  0x24   :  { %v196_v46 = vadd.f32 %v854_v44, %v140_v41  ;;  %v866_v47 = vsel %vm212_vm9, 1.0, %v1045_v25  ;;  %983 = vmatprep.subr.bf16.mxu0 %v982_v42  ;;  %v867_v49 = vsel %vm213_vm10, 1.0, %v1045_v25  ;;  %v29_v50 = vadd.s32 80, %v1087_v3 }
  0x25   :  { %1031 = vset.pattern.permute.xlu0 %v1049_v48  ;;  %v30_v51 = vadd.s32 88, %v1087_v3  ;;  %985 = vmatpush3.bf16.msra.mxu0 %v982_v42  ;;  %v251_v24 = vadd.f32 %v866_v47, %v195_v45  ;;  %v31_v53 = vadd.s32 96, %v1087_v3  ;;  %v1050_v59 = vmov 2  }
  0x26   :  { %465 = vperm.xlu0 %1031, %v1124_v16   ;;  %v252_v52 = vadd.f32 %v867_v49, %v196_v46  ;;  %vm46_vm11 = vcmp.eq.s32.totalorder %v29_v50, %v1126_v17  ;;  %vm102_vm13 = vcmp.eq.s32.totalorder %v29_v50, %v1128_v18  ;;  %436 = vperm.xlu1 %1029, %v1093_v5   ;;  %vm273_vm8 = vcmask 1043456  }
  0x27   :  { %vm47_vm12 = vcmp.eq.s32.totalorder %v30_v51, %v1126_v17  ;;  %vm103_vm14 = vcmp.eq.s32.totalorder %v30_v51, %v1128_v18  ;;  %v829_v55 = vsel %vm46_vm11, 1.0, %v1045_v25  ;;  %v842_v57 = vsel %vm102_vm13, 1.0, %v1045_v25 }
  0x28   :  { %v986_v54 = vpack.c.bf16 %v252_v52, %v251_v24  ;;  %v830_v56 = vsel %vm47_vm12, 1.0, %v1045_v25  ;;  %v843_v58 = vsel %vm103_vm14, 1.0, %v1045_v25  ;;  %v141_v3 = vadd.f32 %v842_v57, %v829_v55  ;;  %v544_v24 = vld [vmem:[%s1412_s2 + $0x18] sm:$0xff] }
  0x29   :  { %vm158_vm15 = vcmp.eq.s32.totalorder %v29_v50, %v1130_v19  ;;  %vm159_vm1 = vcmp.eq.s32.totalorder %v30_v51, %v1130_v19  ;;  %v142_v60 = vadd.f32 %v843_v58, %v830_v56  ;;  %vm214_vm2 = vcmp.eq.s32.totalorder %v29_v50, %v1135_v21  ;;  %v543_v50 = vld [vmem:[%s1412_s2 + $0x10] sm:$0xff] }
  0x2a   :  { %1032 = vset.pattern.permute.xlu0 %v1050_v59  ;;  %987 = vmatprep.subr.bf16.mxu0 %v986_v54  ;;  %v855_v61 = vsel %vm158_vm15, 1.0, %v1045_v25  ;;  %v856_v62 = vsel %vm159_vm1, 1.0, %v1045_v25  ;;  %vm215_vm3 = vcmp.eq.s32.totalorder %v30_v51, %v1135_v21  ;;  %v868_v0 = vsel %vm214_vm2, 1.0, %v1045_v25 }
  0x2b   :  { %485 = vperm.xlu0 %1032, %v1099_v6   ;;  %989 = vmatpush3.bf16.msra.mxu0 %v986_v54  ;;  %v197_v63 = vadd.f32 %v855_v61, %v141_v3  ;;  %vm48_vm4 = vcmp.eq.s32.totalorder %v31_v53, %v1126_v17  ;;  %v198_v1 = vadd.f32 %v856_v62, %v142_v60  ;;  %v869_v2 = vsel %vm215_vm3, 1.0, %v1045_v25 }
  0x2c   :  { %1030 = vset.pattern.permute.xlu1 %v1049_v48  ;;  %v831_v4 = vsel %vm48_vm4, 1.0, %v1045_v25  ;;  %vm104_vm5 = vcmp.eq.s32.totalorder %v31_v53, %v1128_v18  ;;  %vm160_vm6 = vcmp.eq.s32.totalorder %v31_v53, %v1130_v19  ;;  %vm216_vm7 = vcmp.eq.s32.totalorder %v31_v53, %v1135_v21  ;;  %v257_v19 = vld [vmem:[%s1410_s1 + $0x8] sm:$0xff]  ;;  %v258_v21 = vld [vmem:[%s1410_s1 + $0x10] sm:$0xff] }
  0x2d   :  { %461 = vperm.xlu1 %1030, %v1099_v6   ;;  %v253_v7 = vadd.f32 %v868_v0, %v197_v63  ;;  %v844_v8 = vsel %vm104_vm5, 1.0, %v1045_v25  ;;  %v254_v9 = vadd.f32 %v869_v2, %v198_v1  ;;  %v857_v17 = vsel %vm160_vm6, 1.0, %v1045_v25  ;;  %v542_v48 = vld [vmem:[%s1412_s2 + $0x8] sm:$0xff] }
  0x2e   :  { %v143_v10 = vadd.f32 %v844_v8, %v831_v4  ;;  %v870_v12 = vsel %vm216_vm7, 1.0, %v1045_v25  ;;  %v1051_v15 = vmov 5   ;;  %v1052_v25 = vmov 7  }
  0x2f   :  { %497 = vperm.xlu0 %1032, %v1109_v11   ;;  %v990_v13 = vpack.c.bf16 %v254_v9, %v253_v7  ;;  %v1053_v26 = vmov 8  }
  0x30   :  { %v199_v14 = vadd.f32 %v857_v17, %v143_v10 }
  0x31   :  { %469 = vperm.xlu1 %1030, %v1093_v5   ;;  %991 = vmatprep.subr.bf16.mxu0 %v990_v13 }
  0x32   :  { %v255_v18 = vadd.f32 %v870_v12, %v199_v14  ;;  %993 = vmatpush3.bf16.msra.mxu0 %v990_v13 }
  0x33   :  { %1035 = vset.pattern.permute.xlu0 %v1051_v15 }
  0x34   :  { %522 = vperm.xlu0 %1035, %v1124_v16   ;;  %937 = vmatprep.subr.msk.mxu0 %vm273_vm8, %v255_v18 }
  0x35   :  { %473 = vperm.xlu1 %1030, %v1109_v11  }
  0x36   :  { %938 = vmatpush3.msk.msra.mxu0 %vm273_vm8, %v255_v18 }
  0x37   :  { %940 = vmatmul.mubr.msk.f32.vlgmr.msra.gmra.mrb[0].mxu0 %vm260_vm0, %v257_v19 }
  0x38   :  { %1036 = vset.pattern.permute.xlu0 %v1052_v25  ;;  %942 = vmatprep.mubr.msk.f32.mxu0 %vm260_vm0, %v258_v21 }
  0x39   :  { %1033 = vset.pattern.permute.xlu1 %v1050_v59  ;;  %669 = vperm.xlu0 %1036, %v1099_v6  }
  0x3a   :  { %489 = vperm.xlu1 %1033, %v1124_v16  }
  0x3b   :  { %943 = vmatmul.mubr.msk.f32.gmra.mrb[2].mxu0 %vm260_vm0, %v259_v20  ;;  %vm561_vm0 = vcmask 261120  }
  0x3c   :  { %953 = vmatprep.mubr.msk.f32.mxu1 %vm561_vm0, %v541_v27 }
  0x3d   :  { %1039 = vset.pattern.permute.xlu0 %v1053_v26 }
  0x3e   :  { %493 = vperm.xlu1 %1033, %v1093_v5   ;;  %766 = vperm.xlu0 %1039, %v1124_v16  }
  0x42   :  { %1034 = vset.pattern.permute.xlu1 %v1051_v15 }
  0x43   :  { %518 = vperm.xlu1 %1034, %v1099_v6  }
  0x47   :  { %526 = vperm.xlu1 %1034, %v1093_v5  }
  0x4b   :  { %530 = vperm.xlu1 %1034, %v1109_v11  }
  0x4f   :  { %1037 = vset.pattern.permute.xlu1 %v1052_v25 }
  0x50   :  { %674 = vperm.xlu1 %1037, %v1124_v16  }
  0x54   :  { %1038 = vset.pattern.permute.xlu1 %v1053_v26 }
  0x55   :  { %762 = vperm.xlu1 %1038, %v1099_v6  }
  0x59   :  { %770 = vperm.xlu1 %1038, %v1093_v5  }
  0x5d   :  { %774 = vperm.xlu1 %1038, %v1109_v11  }
  0x81   :  { %v1334_v28 = vpop.permute.xlu1 %554 }
  0x83   :  { %v1338_v32 = vpop.permute.xlu0 %546 }
  0x85   :  { %v1336_v29 = vpop.permute.xlu1 %558 }
  0x87   :  { %v1340_v34 = vpop.permute.xlu0 %550 }
  0x8a   :  { %v374_v30 = vpop.permute.xlu1 %373 }
  0x8c   :  { %v369_v11 = vpop.permute.xlu0 %368 }
  0x8e   :  { %v379_v31 = vpop.permute.xlu1 %378 }
  0x90   :  { %v384_v41 = vpop.permute.xlu0 %383 }
  0x93   :  { %v405_v33 = vpop.permute.xlu1 %404 }
  0x95   :  { %v409_v57 = vpop.permute.xlu0 %408 }
  0x97   :  { %v413_v5 = vpop.permute.xlu1 %412 }
  0x9b   :  { %v417_v36 = vpop.permute.xlu1 %416 }
  0x9c   :  { %v429_v0 = vpop.permute.xlu0 %428 }
  0xa0   :  { %v433_v45 = vpop.permute.xlu1 %432  ;;  %v441_v18 = vpop.permute.xlu0 %440 }
  0xa5   :  { %v437_v52 = vpop.permute.xlu1 %436 }
  0xac   :  { %v462_v55 = vpop.permute.xlu1 %461 }
  0xb0   :  { %v470_v59 = vpop.permute.xlu1 %469 }
  0xb4   :  { %v474_v12 = vpop.permute.xlu1 %473 }
  0xb9   :  { %v490_v20 = vpop.permute.xlu1 %489 }
 0x10a   :  { %v1342_v35 = vpop.f32.mrb[0].mxu0 }
 0x10b   :  { %v387_v22 = vmul.f32 %v1342_v35, %v374_v30  ;;  %v1345_v23 = vpop.f32.mrb[1].mxu0 }
 0x10c   :  { %v386_v37 = vmul.f32 %v369_v11, %v1345_v23  ;;  %v994_v38 = vpack.c.bf16 %v1342_v35, %v1345_v23  ;;  %v466_v11 = vpop.permute.xlu0 %465 }
 0x10e   :  { %v1350_v39 = vpop.f32.mrb[2].mxu0  ;;  %995 = vmatprep.subr.bf16.mxu1 %v994_v38  ;;  %v390_v40 = vadd.f32 %v387_v22, %v386_v37 }
 0x10f   :  { %v1352_v42 = vpop.f32.mrb[3].mxu0  ;;  %997 = vmatpush3.bf16.msra.mxu1 %v994_v38  ;;  %v389_v46 = vmul.f32 %v1350_v39, %v384_v41 }
 0x110   :  { %v388_v43 = vmul.f32 %v379_v31, %v1352_v42  ;;  %v998_v44 = vpack.c.bf16 %v1350_v39, %v1352_v42  ;;  %v494_v31 = vpop.permute.xlu1 %493 }
 0x112   :  { %v391_v47 = vadd.f32 %v390_v40, %v388_v43  ;;  %999 = vmatprep.subr.bf16.mxu1 %v998_v44 }
 0x113   :  { %1001 = vmatpush3.bf16.msra.mxu1 %v998_v44  ;;  %v486_v44 = vpop.permute.xlu0 %485 }
 0x114   :  { %v392_v49 = vadd.f32 %v391_v47, %v389_v46 }
 0x116   :  { %v393_v51 = vrot.slane %v392_v49, 4  ;;  %954 = vmatmul.mubr.msk.f32.vlgmr.msra.gmra.mrb[0].mxu1 %vm561_vm0, %v542_v48 }
 0x117   :  { %956 = vmatprep.mubr.msk.f32.mxu1 %vm561_vm0, %v543_v50 }
 0x118   :  { %v394_v53 = vadd.f32 %v393_v51, %v392_v49 }
 0x11a   :  { %v395_v54 = vrot.slane %v394_v53, 2  ;;  %957 = vmatmul.mubr.msk.f32.gmra.mrb[2].mxu1 %vm561_vm0, %v544_v24 }
 0x11c   :  { %v396_v56 = vadd.f32 %v395_v54, %v394_v53 }
 0x11e   :  { %v397_v58 = vrot.slane %v396_v56, 1 }
 0x120   :  { %v398_v3 = vadd.f32 %v397_v58, %v396_v56  ;;  %v498_v56 = vpop.permute.xlu0 %497 }
 0x122   :  { %v399_v60 = vmul.f32 %v398_v3, %v1345_v23  ;;  %v401_v61 = vmul.f32 %v398_v3, %v1352_v42  ;;  %v402_v62 = vmul.f32 %v1350_v39, %v398_v3  ;;  %v400_v63 = vmul.f32 %v1342_v35, %v398_v3 }
 0x124   :  { %v419_v1 = vadd.f32 %v405_v33, %v399_v60  ;;  %v421_v2 = vadd.f32 %v413_v5, %v401_v61  ;;  %v422_v4 = vadd.f32 %v417_v36, %v402_v62  ;;  %v420_v7 = vadd.f32 %v409_v57, %v400_v63  ;;  %v519_v36 = vpop.permute.xlu1 %518 }
 0x126   :  { %v424_v8 = vadd.f32 %v1342_v35, %v420_v7  ;;  %v423_v9 = vadd.f32 %v419_v1, %v1345_v23  ;;  %v425_v10 = vadd.f32 %v421_v2, %v1352_v42  ;;  %v426_v17 = vadd.f32 %v1350_v39, %v422_v4 }
 0x128   :  { %v444_v13 = vmul.f32 %v433_v45, %v424_v8  ;;  %v443_v14 = vmul.f32 %v429_v0, %v423_v9  ;;  %v445_v19 = vmul.f32 %v437_v52, %v425_v10  ;;  %v446_v25 = vmul.f32 %v441_v18, %v426_v17  ;;  %v527_v49 = vpop.permute.xlu1 %526 }
 0x12a   :  { %v447_v15 = vadd.f32 %v444_v13, %v443_v14 }
 0x12c   :  { %v448_v21 = vadd.f32 %v447_v15, %v445_v19  ;;  %v531_v3 = vpop.permute.xlu1 %530 }
 0x12e   :  { %v449_v26 = vadd.f32 %v448_v21, %v446_v25 }
 0x130   :  { %v450_v27 = vrot.slane %v449_v26, 4  ;;  %v1382_v0 = vpop.permute.xlu1 %674 }
 0x132   :  { %v451_v30 = vadd.f32 %v450_v27, %v449_v26 }
 0x134   :  { %v452_v33 = vrot.slane %v451_v30, 2  ;;  %v763_v4 = vpop.permute.xlu1 %762 }
 0x136   :  { %v453_v5 = vadd.f32 %v452_v33, %v451_v30 }
 0x138   :  { %v454_v22 = vrot.slane %v453_v5, 1  ;;  %v771_v14 = vpop.permute.xlu1 %770 }
 0x13a   :  { %v455_v37 = vadd.f32 %v454_v22, %v453_v5 }
 0x13c   :  { %v456_v38 = vmul.f32 %v455_v37, %v1345_v23  ;;  %v458_v40 = vmul.f32 %v455_v37, %v1352_v42  ;;  %v459_v41 = vmul.f32 %v1350_v39, %v455_v37  ;;  %v457_v43 = vmul.f32 %v1342_v35, %v455_v37  ;;  %v775_v5 = vpop.permute.xlu1 %774  ;;  %v760_v37 = vld [vmem:[%s1411_s3] sm:$0x1] }
 0x13e   :  { %v476_v45 = vadd.f32 %v462_v55, %v456_v38  ;;  %v478_v46 = vadd.f32 %v470_v59, %v458_v40  ;;  %v479_v47 = vadd.f32 %v474_v12, %v459_v41  ;;  %v477_v48 = vadd.f32 %v466_v11, %v457_v43  ;;  %v523_v59 = vpop.permute.xlu0 %522 }
 0x13f   :  { %v1055_v38 = vmov 10  }
 0x140   :  { %v481_v50 = vadd.f32 %v477_v48, %v424_v8  ;;  %v480_v51 = vadd.f32 %v476_v45, %v423_v9  ;;  %v482_v24 = vadd.f32 %v478_v46, %v425_v10  ;;  %v483_v52 = vadd.f32 %v479_v47, %v426_v17 }
 0x142   :  { %v501_v53 = vmul.f32 %v490_v20, %v481_v50  ;;  %v500_v54 = vmul.f32 %v486_v44, %v480_v51  ;;  %v502_v58 = vmul.f32 %v494_v31, %v482_v24  ;;  %v503_v61 = vmul.f32 %v498_v56, %v483_v52  ;;  %v670_v8 = vpop.permute.xlu0 %669 }
 0x144   :  { %v504_v57 = vadd.f32 %v501_v53, %v500_v54 }
 0x146   :  { %v505_v60 = vadd.f32 %v504_v57, %v502_v58  ;;  %v767_v25 = vpop.permute.xlu0 %766 }
 0x148   :  { %v506_v62 = vadd.f32 %v505_v60, %v503_v61 }
 0x14a   :  { %v507_v63 = vrot.slane %v506_v62, 4 }
 0x14c   :  { %v508_v55 = vadd.f32 %v507_v63, %v506_v62 }
 0x14e   :  { %v509_v1 = vrot.slane %v508_v55, 2 }
 0x150   :  { %v510_v2 = vadd.f32 %v509_v1, %v508_v55 }
 0x152   :  { %v511_v7 = vrot.slane %v510_v2, 1 }
 0x154   :  { %v512_v9 = vadd.f32 %v511_v7, %v510_v2 }
 0x156   :  { %v513_v10 = vmul.f32 %v512_v9, %v1345_v23  ;;  %v515_v17 = vmul.f32 %v512_v9, %v1352_v42  ;;  %v516_v12 = vmul.f32 %v1350_v39, %v512_v9  ;;  %v514_v13 = vmul.f32 %v1342_v35, %v512_v9  ;;  %v663_v35 = vld [vmem:[%s1412_s2 + $0x20] sm:$0xff] }
 0x157   :  { %967 = vmatprep.mubr.msk.f32.mxu1 %vm561_vm0, %v663_v35 }
 0x158   :  { %v533_v18 = vadd.f32 %v519_v36, %v513_v10  ;;  %v535_v15 = vadd.f32 %v527_v49, %v515_v17  ;;  %v536_v19 = vadd.f32 %v531_v3, %v516_v12  ;;  %v534_v21 = vadd.f32 %v523_v59, %v514_v13 }
 0x159   :  { %v1054_v36 = vmov 9  }
 0x15a   :  { %v537_v20 = vadd.f32 %v533_v18, %v480_v51  ;;  %v539_v26 = vadd.f32 %v535_v15, %v482_v24  ;;  %v540_v27 = vadd.f32 %v536_v19, %v483_v52  ;;  %v538_v30 = vadd.f32 %v534_v21, %v481_v50  ;;  %1041 = vset.pattern.permute.xlu1 %v1054_v36 }
 0x15b   :  { %1040 = vset.pattern.permute.xlu0 %v1054_v36  ;;  %795 = vperm.xlu1 %1041, %v1124_v16  }
 0x15c   :  { %v777_v31 = vmul.f32 %v763_v4, %v537_v20  ;;  %v778_v33 = vmul.f32 %v767_v25, %v538_v30  ;;  %v779_v23 = vmul.f32 %v771_v14, %v539_v26  ;;  %v780_v42 = vmul.f32 %v775_v5, %v540_v27  ;;  %791 = vperm.xlu0 %1040, %v1099_v6  }
 0x15e   :  { %v781_v11 = vadd.f32 %v778_v33, %v777_v31 }
 0x15f   :  { %1042 = vset.pattern.permute.xlu1 %v1055_v38 }
 0x160   :  { %v782_v22 = vadd.f32 %v781_v11, %v779_v23  ;;  %1043 = vset.pattern.permute.xlu0 %v1055_v38  ;;  %810 = vperm.xlu1 %1042, %v760_v37  }
 0x162   :  { %v783_v39 = vadd.f32 %v782_v22, %v780_v42 }
 0x1db   :  { %v792_v57 = vpop.permute.xlu0 %791 }
 0x1e9   :  { %v955_v40 = vpop.f32.mrb[0].mxu1 }
 0x1ea   :  { %v646_v41 = vadd.f32 %v955_v40, %v1340_v34  ;;  %v640_v43 = vpop.f32.mrb[1].mxu1  ;;  %v784_v34 = vrot.slane %v783_v39, 4 }
 0x1eb   :  { %v641_v44 = vadd.f32 %v640_v43, %v1338_v32  ;;  %v664_v32 = vld [vmem:[%s1412_s2 + $0x28] sm:$0xff] }
 0x1ec   :  { %v660_v45 = vmax.f32 %v646_v41, 0.0  ;;  %v785_v3 = vadd.f32 %v784_v34, %v783_v39 }
 0x1ed   :  { %v659_v46 = vmax.f32 %v641_v44, 0.0  ;;  %v958_v47 = vpop.f32.mrb[2].mxu1 }
 0x1ee   :  { %v656_v16 = vadd.f32 %v958_v47, %v1336_v29  ;;  %v650_v6 = vpop.f32.mrb[3].mxu1  ;;  %v786_v63 = vrot.slane %v785_v3, 2 }
 0x1ef   :  { %v1002_v48 = vpack.c.bf16 %v660_v45, %v659_v46  ;;  %v651_v49 = vadd.f32 %v650_v6, %v1334_v28  ;;  %v796_v28 = vpop.permute.xlu1 %795 }
 0x1f0   :  { %v662_v50 = vmax.f32 %v656_v16, 0.0  ;;  %v787_v1 = vadd.f32 %v786_v63, %v785_v3 }
 0x1f1   :  { %v661_v51 = vmax.f32 %v651_v49, 0.0  ;;  %1003 = vmatprep.subr.bf16.mxu1 %v1002_v48 }
 0x1f2   :  { %1005 = vmatpush3.bf16.msra.mxu1 %v1002_v48  ;;  %v788_v4 = vrot.slane %v787_v1, 1 }
 0x1f3   :  { %v1006_v24 = vpack.c.bf16 %v662_v50, %v661_v51  ;;  %v811_v17 = vpop.permute.xlu1 %810 }
 0x1f4   :  { %v789_v10 = vadd.f32 %v788_v4, %v787_v1 }
 0x1f5   :  { %1007 = vmatprep.subr.bf16.mxu1 %v1006_v24 }
 0x1f6   :  { %1009 = vmatpush3.bf16.msra.mxu1 %v1006_v24 }
 0x1f9   :  { %968 = vmatmul.mubr.msk.f32.vlgmr.msra.gmra.mrb[4].mxu1 %vm561_vm0, %v664_v32 }
 0x2cc   :  { %v969_v52 = vpop.f32.mrb[4].mxu1 }
 0x2cd   :  { %v755_v29 = vadd.f32 %v969_v52, %v1382_v0  ;;  %v749_v53 = vpop.f32.mrb[5].mxu1 }
 0x2ce   :  { %v750_v54 = vadd.f32 %v749_v53, %v670_v8 }
 0x2cf   :  { %v759_v56 = vmax.f32 %v755_v29, 0.0 }
 0x2d0   :  { %v758_v58 = vmax.f32 %v750_v54, 0.0 }
 0x2d1   :  { %v799_v60 = vmul.f32 %v796_v28, %v759_v56 }
 0x2d2   :  { %v798_v61 = vmul.f32 %v792_v57, %v758_v58 }
 0x2d4   :  { %v800_v62 = vadd.f32 %v799_v60, %v798_v61 }
 0x2d6   :  { %v801_v55 = vrot.slane %v800_v62, 4 }
 0x2d8   :  { %v802_v59 = vadd.f32 %v801_v55, %v800_v62 }
 0x2da   :  { %v803_v2 = vrot.slane %v802_v59, 2 }
 0x2dc   :  { %v804_v7 = vadd.f32 %v803_v2, %v802_v59 }
 0x2de   :  { %v805_v9 = vrot.slane %v804_v7, 1 }
 0x2e0   :  { %v806_v0 = vadd.f32 %v805_v9, %v804_v7 }
 0x2e2   :  { %v807_v8 = vadd.f32 %v806_v0, %v789_v10 }
 0x2e4   :  { %v813_v12 = vadd.f32 %v811_v17, %v807_v8 }
 0x2e6   :  { %814 = vst [vmem:[%s1413_s4] sm:$0x1] %v813_v12 }

</bundles_post_ra>
